<compile_context>
chip_gen: v7x
topology: tpu7x:2x2x1
jax: 0.10.0
libtpu: 0.0.40
codegen_flags: <defaults>
</compile_context>

<pallas_src>
import functools

import jax
import jax.numpy as jnp
from jax.experimental import pallas as pl
from jax.experimental.pallas import tpu as pltpu


def _round_up(x, m):
    return ((x + m - 1) // m) * m


def _proden_kernel(predict_ref, target_ref, newt_ref, loss_ref, *, n_rows, tb, ragged):
    p = predict_ref[...].astype(jnp.float32)                   # (tb, C)
    t = target_ref[...].astype(jnp.float32)                    # (tb, C)

    if ragged:
        # Last grid step overhangs N: mask garbage rows (reads past N are
        # unspecified) so they contribute nothing; their writes are dropped.
        base = pl.program_id(0) * tb
        rows = jax.lax.broadcasted_iota(jnp.int32, (tb, 1), 0) + base
        valid = rows < n_rows
        p = jnp.where(valid, p, 0.0)
        t = jnp.where(valid, t, 0.0)

    # Numerically stable softmax pieces.
    m = jnp.max(p, axis=1, keepdims=True)
    e = jnp.exp(p - m)
    s = jnp.sum(e, axis=1, keepdims=True)

    # sum_j t*log_softmax(p) == sum_j t*(p-m) - log(s) * sum_j t   (no log_out temp)
    row_loss = (jnp.sum(t * (p - m), axis=1, keepdims=True)
                - jnp.log(s) * jnp.sum(t, axis=1, keepdims=True))
    block_loss = jnp.sum(row_loss)

    # new_target: binarize(target) * softmax; the softmax's 1/s cancels in the
    # per-row renormalization, so work on the raw exponentials.
    r = jnp.where(t > 0, e, 0.0)
    r_sum = jnp.sum(r, axis=1, keepdims=True)
    r_sum = jnp.where(r_sum > 0, r_sum, 1.0)     # guard all-zero rows (ref -> NaN)
    newt_ref[...] = (r * pl.reciprocal(r_sum, approx=False)).astype(newt_ref.dtype)

    # Per-block partial loss into its own output block -> grid remains parallel.
    loss_ref[...] = jnp.zeros(loss_ref.shape, jnp.float32) + block_loss


def proden_partial_loss(predict, target, *, max_tb=8192):
    """predict, target: (N, C). Returns (scalar loss, (N, C) new_target)."""
    N, C = predict.shape
    assert target.shape == (N, C)

    # Generation-aware VMEM budget (v5e/v6e: 128 MiB, v7x: 64 MiB per TC).
    try:
        vmem_cap = int(pltpu.get_tpu_info().vmem_capacity_bytes)
    except Exception:
        vmem_cap = 64 << 20                       # conservative fallback (v7x)
    budget = int(vmem_cap * 0.45)                 # pipeline working-set budget
    vmem_limit = int(min(vmem_cap * 4 // 5, 100 << 20))

    # VMEM footprint of one (tb, C) f32 block row (lanes round up to 128).
    row_bytes = _round_up(C, 128) * 4
    # ~10 resident blocks: 2 inputs + 1 output double-buffered + compiler temps.
    rows_fit = max(16, (budget // (10 * row_bytes)) // 16 * 16)

    tb = min(max_tb, rows_fit)
    # Keep >= 4 grid steps so v7x's two TensorCores both get balanced work.
    tb = min(tb, max(16, _round_up(-(-N // 4), 16)))
    if tb >= N:
        tb = N                                    # single full-extent block
    G = -(-N // tb)
    ragged = (N % tb) != 0

    kernel = functools.partial(_proden_kernel, n_rows=N, tb=tb, ragged=ragged)

    newt, loss_parts = pl.pallas_call(
        kernel,
        out_shape=(
            jax.ShapeDtypeStruct((N, C), predict.dtype),
            jax.ShapeDtypeStruct((G, 8, 128), jnp.float32),
        ),
        grid_spec=pltpu.PrefetchScalarGridSpec(
            num_scalar_prefetch=0,
            grid=(G,),
            in_specs=[
                pl.BlockSpec((tb, C), lambda i: (i, 0)),
                pl.BlockSpec((tb, C), lambda i: (i, 0)),
            ],
            out_specs=[
                pl.BlockSpec((tb, C), lambda i: (i, 0)),
                pl.BlockSpec((1, 8, 128), lambda i: (i, 0, 0)),
            ],
        ),
        compiler_params=pltpu.CompilerParams(
            dimension_semantics=("parallel",),    # fully independent blocks
            vmem_limit_bytes=vmem_limit,
        ),
    )(predict, target)

    # Each loss block is one scalar broadcast over 8*128 lanes: sum-all / 1024.
    loss = -jnp.sum(loss_parts) / (1024.0 * N)
    return loss, newt


def _reference(predict, target):
    out = jax.nn.softmax(predict, axis=1)
    l = target * jnp.log(out)
    loss = -jnp.sum(l) / predict.shape[0]
    rY = jnp.where(target > 0, 1.0, 0.0) * out
    rY = rY / jnp.sum(rY, axis=1, keepdims=True)
    return loss, rY


if __name__ == "__main__":
    key = jax.random.PRNGKey(0)
    k_a, k_b = jax.random.split(key)

    def make_inputs(k, n, c):
        k1, k2 = jax.random.split(k)
        predict = jax.random.normal(k1, (n, c), dtype=jnp.float32)
        # Partial-label target: random 0/1 mask with at least one positive per row.
        mask = (jax.random.uniform(k2, (n, c)) < 0.25).astype(jnp.float32)
        true_cls = jnp.arange(n) % c
        target = jnp.maximum(mask, jax.nn.one_hot(true_cls, c, dtype=jnp.float32))
        return predict, target

    # Case 1: small batch, single full-extent block.
    predict, target = make_inputs(k_a, 16, 32)
    loss, new_target = proden_partial_loss(predict, target)
    jax.block_until_ready((loss, new_target))
    ref_loss, ref_nt = _reference(predict, target)
    assert jnp.allclose(loss, ref_loss, rtol=1e-5, atol=1e-5)
    assert jnp.allclose(new_target, ref_nt, rtol=1e-5, atol=1e-5)

    # Case 2: multi-block grid with a ragged last block (exercises in-kernel masking).
    predict2, target2 = make_inputs(k_b, 50, 10)
    loss2, new_target2 = proden_partial_loss(predict2, target2, max_tb=16)
    jax.block_until_ready((loss2, new_target2))
    ref_loss2, ref_nt2 = _reference(predict2, target2)
    assert jnp.allclose(loss2, ref_loss2, rtol=1e-5, atol=1e-5)
    assert jnp.allclose(new_target2, ref_nt2, rtol=1e-5, atol=1e-5)

    print("KERNEL_OK")
</pallas_src>

<mosaic_0001>
module attributes {stable_mosaic.version = 11 : i64} {
  func.func @_proden_kernel(%arg0: i32, %arg1: memref<16x32xf32, #tpu.memory_space<vmem>>, %arg2: memref<16x32xf32, #tpu.memory_space<vmem>>, %arg3: memref<16x32xf32, #tpu.memory_space<vmem>>, %arg4: memref<1x8x128xf32, #tpu.memory_space<vmem>>) attributes {dimension_semantics = [#tpu.dimension_semantics<parallel>], iteration_bounds = array<i64: 1>, scalar_prefetch = 0 : i64, scratch_operands = 0 : i64, tpu.core_type = #tpu.core_type<tc>, window_params = [{transform_indices = @transform_0, window_bounds = array<i64: 16, 32>}, {transform_indices = @transform_1, window_bounds = array<i64: 16, 32>}, {transform_indices = @transform_2, window_bounds = array<i64: 16, 32>}, {transform_indices = @transform_3, window_bounds = array<i64: 1, 8, 128>}]} {
    %c0 = arith.constant 0 : index
    %c0_0 = arith.constant 0 : index
    %0 = vector.load %arg1[%c0, %c0_0] : memref<16x32xf32, #tpu.memory_space<vmem>>, vector<16x32xf32>
    %c0_1 = arith.constant 0 : index
    %c0_2 = arith.constant 0 : index
    %1 = vector.load %arg2[%c0_1, %c0_2] : memref<16x32xf32, #tpu.memory_space<vmem>>, vector<16x32xf32>
    %cst = arith.constant dense<0xFF800000> : vector<16xf32>
    %2 = vector.multi_reduction <maximumf>, %0, %cst [1] : vector<16x32xf32> to vector<16xf32>
    %3 = vector.shape_cast %2 : vector<16xf32> to vector<16x1xf32>
    %4 = vector.broadcast %3 : vector<16x1xf32> to vector<16x32xf32>
    %5 = arith.subf %0, %4 : vector<16x32xf32>
    %6 = math.exp %5 : vector<16x32xf32>
    %cst_3 = arith.constant dense<0.000000e+00> : vector<16xf32>
    %7 = vector.multi_reduction <add>, %6, %cst_3 [1] : vector<16x32xf32> to vector<16xf32>
    %8 = vector.shape_cast %7 : vector<16xf32> to vector<16x1xf32>
    %9 = vector.broadcast %3 : vector<16x1xf32> to vector<16x32xf32>
    %10 = arith.subf %0, %9 : vector<16x32xf32>
    %11 = arith.mulf %1, %10 : vector<16x32xf32>
    %cst_4 = arith.constant dense<0.000000e+00> : vector<16xf32>
    %12 = vector.multi_reduction <add>, %11, %cst_4 [1] : vector<16x32xf32> to vector<16xf32>
    %13 = vector.shape_cast %12 : vector<16xf32> to vector<16x1xf32>
    %14 = math.log %8 : vector<16x1xf32>
    %cst_5 = arith.constant dense<0.000000e+00> : vector<16xf32>
    %15 = vector.multi_reduction <add>, %1, %cst_5 [1] : vector<16x32xf32> to vector<16xf32>
    %16 = vector.shape_cast %15 : vector<16xf32> to vector<16x1xf32>
    %17 = arith.mulf %14, %16 : vector<16x1xf32>
    %18 = arith.subf %13, %17 : vector<16x1xf32>
    %19 = vector.shape_cast %18 : vector<16x1xf32> to vector<1x16x1xf32>
    %cst_6 = arith.constant dense<0.000000e+00> : vector<1xf32>
    %20 = vector.multi_reduction <add>, %19, %cst_6 [1, 2] : vector<1x16x1xf32> to vector<1xf32>
    %21 = vector.shape_cast %20 : vector<1xf32> to vector<1x1x1xf32>
    %22 = vector.extract %21[0, 0, 0] : f32 from vector<1x1x1xf32>
    %cst_7 = arith.constant 0.000000e+00 : f32
    %23 = vector.broadcast %cst_7 : f32 to vector<16x32xf32>
    %24 = arith.cmpf ogt, %1, %23 : vector<16x32xf32>
    %cst_8 = arith.constant 0.000000e+00 : f32
    %25 = vector.broadcast %cst_8 : f32 to vector<16x32xf32>
    %26 = arith.select %24, %6, %25 : vector<16x32xi1>, vector<16x32xf32>
    %cst_9 = arith.constant dense<0.000000e+00> : vector<16xf32>
    %27 = vector.multi_reduction <add>, %26, %cst_9 [1] : vector<16x32xf32> to vector<16xf32>
    %28 = vector.shape_cast %27 : vector<16xf32> to vector<16x1xf32>
    %cst_10 = arith.constant 0.000000e+00 : f32
    %29 = vector.broadcast %cst_10 : f32 to vector<16x1xf32>
    %30 = arith.cmpf ogt, %28, %29 : vector<16x1xf32>
    %cst_11 = arith.constant 1.000000e+00 : f32
    %31 = vector.broadcast %cst_11 : f32 to vector<16x1xf32>
    %32 = arith.select %30, %28, %31 : vector<16x1xi1>, vector<16x1xf32>
    %33 = tpu.reciprocal %32 : vector<16x1xf32> -> vector<16x1xf32>
    %34 = vector.broadcast %33 : vector<16x1xf32> to vector<16x32xf32>
    %35 = arith.mulf %26, %34 : vector<16x32xf32>
    %c0_12 = arith.constant 0 : index
    %c0_13 = arith.constant 0 : index
    %36 = vector.load %arg3[%c0_12, %c0_13] : memref<16x32xf32, #tpu.memory_space<vmem>>, vector<16x32xf32>
    tpu.vector_store %arg3[%c0_12, %c0_13], %35 {strides = array<i32>} : memref<16x32xf32, #tpu.memory_space<vmem>>, vector<16x32xf32>,
    %cst_14 = arith.constant 0.000000e+00 : f32
    %37 = vector.broadcast %cst_14 : f32 to vector<1x8x128xf32>
    %38 = vector.broadcast %22 : f32 to vector<1x8x128xf32>
    %39 = arith.addf %37, %38 : vector<1x8x128xf32>
    %c0_15 = arith.constant 0 : index
    %c0_16 = arith.constant 0 : index
    %c0_17 = arith.constant 0 : index
    %40 = vector.load %arg4[%c0_15, %c0_16, %c0_17] : memref<1x8x128xf32, #tpu.memory_space<vmem>>, vector<1x8x128xf32>
    tpu.vector_store %arg4[%c0_15, %c0_16, %c0_17], %39 {strides = array<i32>} : memref<1x8x128xf32, #tpu.memory_space<vmem>>, vector<1x8x128xf32>,
    return
  }
  func.func @transform_0(%arg0: i32) -> (i32, i32) {
    %c0_i32 = arith.constant 0 : i32
    %c0_i32_0 = arith.constant 0 : i32
    return %arg0, %c0_i32 : i32, i32
  }
  func.func @transform_1(%arg0: i32) -> (i32, i32) {
    %c0_i32 = arith.constant 0 : i32
    %c0_i32_0 = arith.constant 0 : i32
    return %arg0, %c0_i32 : i32, i32
  }
  func.func @transform_2(%arg0: i32) -> (i32, i32) {
    %c0_i32 = arith.constant 0 : i32
    %c0_i32_0 = arith.constant 0 : i32
    return %arg0, %c0_i32 : i32, i32
  }
  func.func @transform_3(%arg0: i32) -> (i32, i32, i32) {
    %c0_i32 = arith.constant 0 : i32
    %c0_i32_0 = arith.constant 0 : i32
    %c0_i32_1 = arith.constant 0 : i32
    return %arg0, %c0_i32, %c0_i32_0 : i32, i32, i32
  }
}

</mosaic_0001>

<bundles_post_ra>
// kernel: tpu_custom_call.1
= control target key start
LH: loop header
LB: loop body
LE: loop exit
PB: predicated region body
PF: predicated region fallthrough
CT: control target
= control target key end

     0   :  { %9 = vsyncpa [#allocation3], 0  ;;  %s367_s0 = inlined_call_operand.hbm [shape: f32[16,32], index: 0, kind: input, shape index: {}]   ;;  %s368_s1 = inlined_call_operand.hbm [shape: f32[16,32], index: 1, kind: input, shape index: {}]   ;;  %s369_s2 = inlined_call_operand.hbm [shape: f32[16,32], index: 2, kind: output, shape index: {0}]   ;;  %s370_s3 = inlined_call_operand.hbm [shape: f32[1,8,128], index: 3, kind: output, shape index: {1}]  }
   0x1   :  { %10 = vsyncpa [#allocation6], 0 }
   0x2   :  { %11 = vsyncpa [#allocation4], 0 }
   0x3   :  { %12 = vsyncpa [#allocation9], 0  ;;  %s272_s12 = smov [#allocation2]   ;;  %s176_s16 = scalar_lea.hbm %s367_s0, 256 }
   0x4   :  { %s18_s13 = sshll.u32 %s272_s12, 4  ;;  %p177_p0 = scmp.ne.s32.totalorder %s367_s0, %s176_s16  ;;  %s19_s13 = int_to_ptr.vmem [resolvable:$true] %s18_s13 }
   0x5   :  { %p180_p1 = scmp.lt.u32.totalorder %s176_s16, %s367_s0 }
   0x7   :  { %p182_p2 = pnand %p180_p1, %p177_p0 }
   0x9   :  { %185 = shalt.err (!%p182_p2)
}
   0xa   :  { %s186_s21 = scalar_lea.vmem %s19_s13, 256  ;;  %p191_p4 = scmp.lt.s32.totalorder %s19_s13, %s19_s13 }
   0xb   :  { %p187_p3 = scmp.ne.s32.totalorder %s19_s13, %s186_s21  ;;  %p192_p5 = scmp.lt.s32.totalorder %s186_s21, %s186_s21 }
   0xd   :  { %p193_p6 = por %p192_p5, %p191_p4 }
   0xf   :  { %p194_p7 = pnand %p193_p6, %p187_p3 }
  0x11   :  { %197 = shalt.err (!%p194_p7)
}
  0x12   :  { %s273_s22 = smov 128   ;;  %s274_s23 = smov 8  }
  0x13   :  { %24 = dma.hbm_to_vmem [thread:$0]  %s367_s0, 256, %s19_s13, [#allocation3], %s273_s22, %s273_s22, %s274_s23  }
  0x14   :  { %s275_s26 = smov [#allocation5]   ;;  %s198_s30 = scalar_lea.hbm %s368_s1, 256 }
  0x15   :  { %s30_s27 = sshll.u32 %s275_s26, 4  ;;  %p199_p8 = scmp.ne.s32.totalorder %s368_s1, %s198_s30  ;;  %s31_s27 = int_to_ptr.vmem [resolvable:$true] %s30_s27 }
  0x16   :  { %p202_p9 = scmp.lt.u32.totalorder %s198_s30, %s368_s1 }
  0x18   :  { %p204_p10 = pnand %p202_p9, %p199_p8 }
  0x1a   :  { %207 = shalt.err (!%p204_p10)
}
  0x1b   :  { %s208_s8 = scalar_lea.vmem %s31_s27, 256  ;;  %p213_p12 = scmp.lt.s32.totalorder %s31_s27, %s31_s27 }
  0x1c   :  { %p209_p11 = scmp.ne.s32.totalorder %s31_s27, %s208_s8  ;;  %p214_p13 = scmp.lt.s32.totalorder %s208_s8, %s208_s8 }
  0x1e   :  { %p215_p0 = por %p214_p13, %p213_p12 }
  0x20   :  { %p216_p1 = pnand %p215_p0, %p209_p11 }
  0x22   :  { %219 = shalt.err (!%p216_p1)
}
  0x23   :  { %36 = dma.hbm_to_vmem [thread:$0]  %s368_s1, 256, %s31_s27, [#allocation6], %s273_s22, %s273_s22, %s274_s23  }
  0x24   :  { %264 = dma.done.wait [#allocation3], 256  }
  0x25   :  { %265 = vsyncadd [#allocation3], 4294967040 }
  0x26   :  { %266 = dma.done.wait [#allocation6], 256  }
  0x27   :  { %267 = vsyncadd [#allocation6], 4294967040  ;;  %vm47_vm0 = vcmask 261120   ;;  %v43_v0 = vld [vmem:[#allocation2] sm:$0xff]  ;;  %v44_v1 = vld [vmem:[#allocation2 + $0x8] sm:$0xff]  ;;  %vm88_vm3 = vcmask 7168  }
  0x28   :  { %v48_v2 = vsel %vm47_vm0, %v43_v0, -inf  ;;  %v51_v3 = vsel %vm47_vm0, %v44_v1, -inf  ;;  %v45_v4 = vld [vmem:[#allocation5] sm:$0xff]  ;;  %v46_v18 = vld [vmem:[#allocation5 + $0x8] sm:$0xff]  ;;  %s276_s1 = smov [#allocation7]  }
  0x29   :  { %49 = vmax.xlane.f32.xlu0 %v48_v2  ;;  %v78_v5 = vsel %vm47_vm0, %v45_v4, 0.0  ;;  %v81_v19 = vsel %vm47_vm0, %v46_v18, 0.0  ;;  %vm101_vm1 = vcmp.gt.f32.partialorder %v45_v4, 0.0  ;;  %vm102_vm4 = vcmp.gt.f32.partialorder %v46_v18, 0.0  ;;  %s129_s10 = sshll.u32 %s276_s1, 4  ;;  %s130_s10 = int_to_ptr.vmem [resolvable:$true] %s129_s10 }
  0x2a   :  { %s220_s11 = scalar_lea.vmem %s130_s10, 256  ;;  %p225_p3 = scmp.lt.s32.totalorder %s130_s10, %s130_s10 }
  0x2b   :  { %p221_p2 = scmp.ne.s32.totalorder %s130_s10, %s220_s11  ;;  %p226_p4 = scmp.lt.s32.totalorder %s220_s11, %s220_s11 }
  0x2d   :  { %52 = vmax.xlane.f32.xlu0 %v51_v3  ;;  %p227_p5 = por %p226_p4, %p225_p3 }
  0x2f   :  { %p228_p6 = pnand %p227_p5, %p221_p2 }
  0x31   :  { %79 = vadd.xlane.f32.xlu0 %v78_v5 }
  0xb6   :  { %v50_v6 = vpop.xlane.xlu0 %49 }
  0xb7   :  { %v54_v7 = vsub.f32 %v43_v0, %v50_v6 }
  0xb9   :  { %v56_v8 = vmul.f32 1.442695, %v54_v7  ;;  %v66_v9 = vmul.f32 %v54_v7, %v45_v4 }
  0xba   :  { %v53_v10 = vpop.xlane.xlu0 %52 }
  0xbb   :  { %164 = vpow2.f32 %v56_v8  ;;  %v55_v11 = vsub.f32 %v44_v1, %v53_v10  ;;  %v68_v12 = vsel %vm47_vm0, %v66_v9, 0.0 }
  0xbc   :  { %69 = vadd.xlane.f32.xlu0 %v68_v12 }
  0xbd   :  { %v58_v13 = vmul.f32 1.442695, %v55_v11  ;;  %v67_v20 = vmul.f32 %v55_v11, %v46_v18 }
  0xbe   :  { %v80_v28 = vpop.xlane.xlu0 %79 }
  0xbf   :  { %166 = vpow2.f32 %v58_v13  ;;  %v71_v21 = vsel %vm47_vm0, %v67_v20, 0.0 }
  0xc5   :  { %v165_v14 = vpop.eup %164 }
  0xc6   :  { %v60_v15 = vsel %vm47_vm0, %v165_v14, 0.0  ;;  %v103_v22 = vsel %vm101_vm1, %v165_v14, 0.0 }
  0xc7   :  { %61 = vadd.xlane.f32.xlu1 %v60_v15  ;;  %v105_v23 = vsel %vm47_vm0, %v103_v22, 0.0 }
  0xc9   :  { %v167_v16 = vpop.eup %166 }
  0xca   :  { %v63_v17 = vsel %vm47_vm0, %v167_v16, 0.0  ;;  %v104_v43 = vsel %vm102_vm4, %v167_v16, 0.0 }
  0xcb   :  { %64 = vadd.xlane.f32.xlu1 %v63_v17  ;;  %v108_v44 = vsel %vm47_vm0, %v104_v43, 0.0 }
  0xcf   :  { %82 = vadd.xlane.f32.xlu1 %v81_v19 }
  0xd3   :  { %72 = vadd.xlane.f32.xlu1 %v71_v21 }
  0xd7   :  { %106 = vadd.xlane.f32.xlu1 %v105_v23 }
 0x149   :  { %v70_v35 = vpop.xlane.xlu0 %69 }
 0x154   :  { %v62_v24 = vpop.xlane.xlu1 %61 }
 0x155   :  { %168 = vlog2.f32 %v62_v24 }
 0x158   :  { %v65_v25 = vpop.xlane.xlu1 %64 }
 0x159   :  { %170 = vlog2.f32 %v65_v25 }
 0x15c   :  { %v83_v26 = vpop.xlane.xlu1 %82 }
 0x15f   :  { %v169_v27 = vpop.eup %168 }
 0x160   :  { %v75_v29 = vmul.f32 0.6931472, %v169_v27  ;;  %v73_v30 = vpop.xlane.xlu1 %72 }
 0x162   :  { %v84_v31 = vmul.f32 %v80_v28, %v75_v29 }
 0x163   :  { %v171_v32 = vpop.eup %170 }
 0x164   :  { %v77_v33 = vmul.f32 0.6931472, %v171_v32  ;;  %v107_v34 = vpop.xlane.xlu1 %106  ;;  %v86_v38 = vsub.f32 %v70_v35, %v84_v31 }
 0x165   :  { %vm111_vm2 = vcmp.gt.f32.partialorder %v107_v34, 0.0 }
 0x166   :  { %v85_v36 = vmul.f32 %v83_v26, %v77_v33  ;;  %v113_v37 = vsel %vm111_vm2, %v107_v34, 1.0  ;;  %v89_v40 = vsel %vm88_vm3, %v86_v38, 0.0 }
 0x167   :  { %172 = vrcp.f32 %v113_v37 }
 0x168   :  { %v87_v39 = vsub.f32 %v73_v30, %v85_v36 }
 0x16a   :  { %v90_v41 = vsel %vm88_vm3, %v87_v39, 0.0 }
 0x16b   :  { %v91_v42 = vadd.f32 %v90_v41, %v89_v40 }
 0x16d   :  { %92 = vadd.xlane.f32.xlu0 %v91_v42 }
 0x171   :  { %v173_v45 = vpop.eup %172  ;;  %109 = vadd.xlane.f32.xlu0 %v108_v44 }
 0x172   :  { %v117_v46 = vmul.f32 %v173_v45, %v103_v22 }
 0x174   :  { %119 = vst.msk [vmem:[#allocation7] sm:$0xff] %vm47_vm0, %v117_v46 }
 0x1fa   :  { %v93_v47 = vpop.xlane.xlu0 %92 }
 0x1fb   :  { %v94_v48 = vrot.slane %v93_v47, 4 }
 0x1fd   :  { %v95_v49 = vadd.f32 %v94_v48, %v93_v47 }
 0x1fe   :  { %v110_v50 = vpop.xlane.xlu0 %109 }
 0x1ff   :  { %v96_v51 = vrot.slane %v95_v49, 2  ;;  %vm112_vm5 = vcmp.gt.f32.partialorder %v110_v50, 0.0 }
 0x200   :  { %v114_v52 = vsel %vm112_vm5, %v110_v50, 1.0 }
 0x201   :  { %174 = vrcp.f32 %v114_v52  ;;  %v97_v53 = vadd.f32 %v96_v51, %v95_v49 }
 0x203   :  { %v98_v54 = vrot.slane %v97_v53, 1 }
 0x205   :  { %v99_v55 = vadd.f32 %v98_v54, %v97_v53 }
 0x207   :  { %156 = vpush %v99_v55 }
 0x20b   :  { %v175_v56 = vpop.eup %174 }
 0x20c   :  { %v118_v57 = vmul.f32 %v175_v56, %v104_v43 }
 0x20e   :  { %120 = vst.msk [vmem:[#allocation7 + $0x8] sm:$0xff] %vm47_vm0, %v118_v57 }
 0x20f   :  { %231 = shalt.err (!%p228_p6)
}
 0x210   :  { %s232_s14 = scalar_lea.hbm %s369_s2, 256 }
 0x211   :  { %p233_p7 = scmp.ne.s32.totalorder %s369_s2, %s232_s14  ;;  %p236_p8 = scmp.lt.u32.totalorder %s232_s14, %s369_s2 }
 0x213   :  { %p238_p9 = pnand %p236_p8, %p233_p7 }
 0x215   :  { %241 = shalt.err (!%p238_p9)
}
 0x216   :  { %135 = dma.vmem_to_hbm [thread:$0]  %s130_s10, 256, %s369_s2, [#allocation4], %s273_s22, %s273_s22, %s274_s23  }
 0x217   :  { %s277_s21 = smov [#allocation8]  }
 0x218   :  { %s142_s24 = sshll.u32 %s277_s21, 4  ;;  %s143_s24 = int_to_ptr.vmem [resolvable:$true] %s142_s24 }
 0x219   :  { %s242_s26 = scalar_lea.vmem %s143_s24, 128  ;;  %p247_p11 = scmp.lt.s32.totalorder %s143_s24, %s143_s24 }
 0x21a   :  { %p243_p10 = scmp.ne.s32.totalorder %s143_s24, %s242_s26  ;;  %p248_p12 = scmp.lt.s32.totalorder %s242_s26, %s242_s26 }
 0x21c   :  { %p249_p13 = por %p248_p12, %p247_p11 }
 0x21e   :  { %p250_p0 = pnand %p249_p13, %p243_p10 }
 0x238   :  { %s157_s25 = spop %156 }
 0x239   :  { %v121_v58 = vstv %s157_s25 }
 0x23a   :  { %123 = vst [vmem:[#allocation8] sm:$0xff] %v121_v58 }
 0x23b   :  { %253 = shalt.err (!%p250_p0)
}
 0x23c   :  { %s254_s29 = scalar_lea.hbm %s370_s3, 128 }
 0x23d   :  { %p255_p1 = scmp.ne.s32.totalorder %s370_s3, %s254_s29  ;;  %p258_p2 = scmp.lt.u32.totalorder %s254_s29, %s370_s3 }
 0x23f   :  { %p260_p3 = pnand %p258_p2, %p255_p1 }
 0x241   :  { %263 = shalt.err (!%p260_p3)
}
 0x242   :  { %145 = dma.vmem_to_hbm [thread:$0]  %s143_s24, 128, %s370_s3, [#allocation9]  }
 0x243   :  { %268 = dma.done.wait [#allocation4], 256  }
 0x244   :  { %269 = vsyncadd [#allocation4], 4294967040 }
 0x245   :  { %270 = dma.done.wait [#allocation9], 128  }
 0x246   :  { %271 = vsyncadd [#allocation9], 4294967168 }
 0x247   :  { %152 = vsyncpa [#allocation3], 1 }
 0x248   :  { %153 = vsyncpa [#allocation6], 1 }
 0x249   :  { %154 = vsyncpa [#allocation4], 1 }
 0x24a   :  { %155 = vsyncpa [#allocation9], 1 }

</bundles_post_ra>
